<compile_context>
chip_gen: v5e
topology: v5e:2x2
jax: 0.10.0
libtpu: 0.0.40
codegen_flags: <defaults>
</compile_context>

<pallas_src>
import jax
import jax.numpy as jnp
from jax.experimental import pallas as pl
from jax.experimental.pallas import tpu as pltpu


def _round_up(x, m):
    return (x + m - 1) // m * m


# -----------------------------------------------------------------------------
# Kernels
# -----------------------------------------------------------------------------

def _resblock_kernel_linear_shortcut(x_ref, w1s_ref, b1s_ref, w2_ref, b2_ref,
                                     o_ref):
    """out = relu(relu(x@W1+b1) @ W2 + b2 + (x@Ws+bs)); [W1|Ws] fused in w1s."""
    x = x_ref[...]                                    # (TM, in_p) bf16
    n = w2_ref.shape[1]                               # out_p (static)

    # One wide MXU call covers both fc1 and the shortcut (shared LHS / K).
    z = jnp.dot(x, w1s_ref[...],
                preferred_element_type=jnp.float32) + b1s_ref[...]
    h = jnp.maximum(z[:, :n], 0.0)                    # fc1 + relu1
    identity = z[:, n:]                               # shortcut branch (f32)

    # dropout (eval mode) -> identity

    out = jnp.dot(h.astype(w2_ref.dtype), w2_ref[...],
                  preferred_element_type=jnp.float32) + b2_ref[...]
    out = out + identity
    o_ref[...] = jnp.maximum(out, 0.0).astype(o_ref.dtype)


def _resblock_kernel_identity_shortcut(x_ref, w1_ref, b1_ref, w2_ref, b2_ref,
                                       o_ref):
    """Identity shortcut (input_size == output_size): no shortcut matmul."""
    x = x_ref[...]                                    # (TM, out_p) bf16
    h = jnp.maximum(
        jnp.dot(x, w1_ref[...], preferred_element_type=jnp.float32)
        + b1_ref[...], 0.0)

    # dropout (eval mode) -> identity

    out = jnp.dot(h.astype(w2_ref.dtype), w2_ref[...],
                  preferred_element_type=jnp.float32) + b2_ref[...]
    out = out + x.astype(jnp.float32)
    o_ref[...] = jnp.maximum(out, 0.0).astype(o_ref.dtype)


# -----------------------------------------------------------------------------
# Parameter preparation (call once at load time, not per forward pass)
# -----------------------------------------------------------------------------

def prepare_params(w1, b1, w2, b2, ws=None, bs=None, act_dtype=jnp.bfloat16):
    """Transpose/pad/cast PyTorch-layout weights to kernel layout, once."""
    out_size, in_size = w1.shape
    in_p = _round_up(in_size, 128)
    out_p = _round_up(out_size, 128)

    def prep_w(w, rows_p, cols_p):
        wt = jnp.asarray(w, jnp.float32).T            # (in, out) so x @ W works
        wt = jnp.pad(wt, ((0, rows_p - wt.shape[0]), (0, cols_p - wt.shape[1])))
        return wt.astype(act_dtype)

    def prep_b(b, cols_p):
        br = jnp.asarray(b, jnp.float32).reshape(1, -1)
        return jnp.pad(br, ((0, 0), (0, cols_p - br.shape[1])))  # keep f32

    params = dict(in_size=in_size, out_size=out_size,
                  in_p=in_p, out_p=out_p, act_dtype=act_dtype,
                  w2=prep_w(w2, out_p, out_p), b2=prep_b(b2, out_p))

    if ws is not None:
        # Fuse fc1 and shortcut weights along the output-feature axis.
        params["kind"] = "linear"
        params["w1s"] = jnp.concatenate(
            [prep_w(w1, in_p, out_p), prep_w(ws, in_p, out_p)], axis=1)
        params["b1s"] = jnp.concatenate(
            [prep_b(b1, out_p), prep_b(bs, out_p)], axis=1)
    else:
        assert in_size == out_size, "identity shortcut requires in == out"
        params["kind"] = "identity"
        params["w1"] = prep_w(w1, in_p, out_p)
        params["b1"] = prep_b(b1, out_p)
    return params


# -----------------------------------------------------------------------------
# Forward wrapper
# -----------------------------------------------------------------------------

def residual_block(x, params, *, tm=512):
    """x: (B, input_size) f32.  Returns (B, output_size) f32."""
    B, in_size = x.shape
    assert in_size == params["in_size"]
    in_p, out_p = params["in_p"], params["out_p"]
    out_size = params["out_size"]
    act_dtype = params["act_dtype"]
    act_bytes = jnp.dtype(act_dtype).itemsize

    # Batch tile: multiple of 8 sublanes, as large as reasonable; pad B to it.
    tm_eff = min(tm, _round_up(B, 8))
    B_p = _round_up(B, tm_eff)
    grid = (B_p // tm_eff,)

    x_p = jnp.pad(x.astype(act_dtype), ((0, B_p - B), (0, in_p - in_size)))

    if params["kind"] == "linear":
        kernel = _resblock_kernel_linear_shortcut
        w1, b1 = params["w1s"], params["b1s"]
        shortcut_flops = 2 * B_p * in_p * out_p
    else:
        kernel = _resblock_kernel_identity_shortcut
        w1, b1 = params["w1"], params["b1"]
        shortcut_flops = 0
    w2, b2 = params["w2"], params["b2"]

    def resident(shape):
        return pl.BlockSpec(shape, lambda i: (0, 0))

    in_specs = [
        pl.BlockSpec((tm_eff, in_p), lambda i: (i, 0)),  # x: tiled over batch
        resident(w1.shape), resident(b1.shape),          # weights stay resident
        resident(w2.shape), resident(b2.shape),
    ]
    out_spec = pl.BlockSpec((tm_eff, out_p), lambda i: (i, 0))

    # VMEM budget: double-buffered x/out tiles + resident weights/biases.
    vmem_needed = (2 * tm_eff * in_p * act_bytes       # x tiles (double-buffer)
                   + 2 * tm_eff * out_p * 4            # out tiles (f32)
                   + (w1.size + w2.size) * act_bytes   # resident weights
                   + (b1.size + b2.size) * 4           # resident biases (f32)
                   + (4 << 20))                        # intermediates / slack
    vmem_limit = int(min(max(2 * vmem_needed, 32 << 20), 60 << 20))

    cost = pl.CostEstimate(
        flops=2 * B_p * in_p * out_p + shortcut_flops + 2 * B_p * out_p * out_p,
        bytes_accessed=(x_p.size * act_bytes
                        + (w1.size + w2.size) * act_bytes
                        + (b1.size + b2.size) * 4
                        + B_p * out_p * 4),
        transcendentals=0,
    )

    out = pl.pallas_call(
        kernel,
        out_shape=jax.ShapeDtypeStruct((B_p, out_p), jnp.float32),
        grid=grid,
        in_specs=in_specs,
        out_specs=out_spec,
        compiler_params=pltpu.CompilerParams(
            dimension_semantics=("parallel",),
            vmem_limit_bytes=vmem_limit),
        cost_estimate=cost,
    )(x_p, w1, b1, w2, b2)

    return out[:B, :out_size]


# -----------------------------------------------------------------------------
# Demo / self-check
# -----------------------------------------------------------------------------

def _torch_linear_init(key, out_features, in_features):
    """Deterministic init mimicking nn.Linear default (U(-k, k), k=1/sqrt(fan_in))."""
    kw, kb = jax.random.split(key)
    bound = 1.0 / jnp.sqrt(jnp.float32(in_features))
    w = jax.random.uniform(kw, (out_features, in_features), jnp.float32,
                           minval=-bound, maxval=bound)
    b = jax.random.uniform(kb, (out_features,), jnp.float32,
                           minval=-bound, maxval=bound)
    return w, b


if __name__ == "__main__":
    key = jax.random.PRNGKey(0)
    k_x, k_fc1, k_fc2, k_sc = jax.random.split(key, 4)

    B, input_size, output_size = 8, 16, 32   # input != output -> Linear shortcut
    dropout_prob = 0.1                        # eval mode -> unused

    x = jax.random.normal(k_x, (B, input_size), jnp.float32)
    w1, b1 = _torch_linear_init(k_fc1, output_size, input_size)
    w2, b2 = _torch_linear_init(k_fc2, output_size, output_size)
    if input_size != output_size:
        ws, bs = _torch_linear_init(k_sc, output_size, input_size)
    else:
        ws, bs = None, None

    params = prepare_params(w1, b1, w2, b2, ws, bs)
    out = residual_block(x, params)
    out = jax.block_until_ready(out)

    # pure-JAX f32 reference (eval-mode dropout)
    identity = (x @ ws.T + bs) if ws is not None else x
    h = jnp.maximum(x @ w1.T + b1, 0.0)
    ref = jnp.maximum(h @ w2.T + b2 + identity, 0.0)
    assert out.shape == ref.shape
    assert jnp.allclose(out, ref, atol=5e-2, rtol=5e-2), "mismatch vs reference"

    print("KERNEL_OK")
</pallas_src>

<mosaic_0001>
module attributes {stable_mosaic.version = 11 : i64} {
  func.func @_resblock_kernel_linear_shortcut(%arg0: i32, %arg1: memref<8x128xbf16, #tpu.memory_space<vmem>>, %arg2: memref<128x256xbf16, #tpu.memory_space<vmem>>, %arg3: memref<1x256xf32, #tpu.memory_space<vmem>>, %arg4: memref<128x128xbf16, #tpu.memory_space<vmem>>, %arg5: memref<1x128xf32, #tpu.memory_space<vmem>>, %arg6: memref<8x128xf32, #tpu.memory_space<vmem>>) attributes {dimension_semantics = [#tpu.dimension_semantics<parallel>], iteration_bounds = array<i64: 1>, scalar_prefetch = 0 : i64, scratch_operands = 0 : i64, tpu.core_type = #tpu.core_type<tc>, window_params = [{transform_indices = @transform_0, window_bounds = array<i64: 8, 128>}, {pipeline_mode = #tpu.pipeline_mode<synchronous>, transform_indices = @transform_1, window_bounds = array<i64: 128, 256>}, {pipeline_mode = #tpu.pipeline_mode<synchronous>, transform_indices = @transform_2, window_bounds = array<i64: 1, 256>}, {pipeline_mode = #tpu.pipeline_mode<synchronous>, transform_indices = @transform_3, window_bounds = array<i64: 128, 128>}, {pipeline_mode = #tpu.pipeline_mode<synchronous>, transform_indices = @transform_4, window_bounds = array<i64: 1, 128>}, {transform_indices = @transform_5, window_bounds = array<i64: 8, 128>}]} {
    %c0 = arith.constant 0 : index
    %c0_0 = arith.constant 0 : index
    %0 = vector.load %arg1[%c0, %c0_0] : memref<8x128xbf16, #tpu.memory_space<vmem>>, vector<8x128xbf16>
    %c0_1 = arith.constant 0 : index
    %c0_2 = arith.constant 0 : index
    %1 = vector.load %arg2[%c0_1, %c0_2] : memref<128x256xbf16, #tpu.memory_space<vmem>>, vector<128x256xbf16>
    %cst = arith.constant dense<0.000000e+00> : vector<8x256xf32>
    %2 = tpu.matmul %0, %1, %cst {dimension_numbers = #tpu.dot_dimension_numbers<[1], [0], [0], [1], [0, 0, 1, 1], [], []>} : vector<8x128xbf16>, vector<128x256xbf16>, vector<8x256xf32> -> vector<8x256xf32>
    %c0_3 = arith.constant 0 : index
    %c0_4 = arith.constant 0 : index
    %3 = vector.load %arg3[%c0_3, %c0_4] : memref<1x256xf32, #tpu.memory_space<vmem>>, vector<1x256xf32>
    %4 = vector.broadcast %3 : vector<1x256xf32> to vector<8x256xf32>
    %5 = arith.addf %2, %4 : vector<8x256xf32>
    %6 = vector.extract_strided_slice %5 {offsets = [0, 0], sizes = [8, 128], strides = [1, 1]} : vector<8x256xf32> to vector<8x128xf32>
    %cst_5 = arith.constant 0.000000e+00 : f32
    %7 = vector.broadcast %cst_5 : f32 to vector<8x128xf32>
    %8 = arith.maximumf %6, %7 : vector<8x128xf32>
    %9 = vector.extract_strided_slice %5 {offsets = [0, 128], sizes = [8, 128], strides = [1, 1]} : vector<8x256xf32> to vector<8x128xf32>
    %10 = arith.truncf %8 : vector<8x128xf32> to vector<8x128xbf16>
    %c0_6 = arith.constant 0 : index
    %c0_7 = arith.constant 0 : index
    %11 = vector.load %arg4[%c0_6, %c0_7] : memref<128x128xbf16, #tpu.memory_space<vmem>>, vector<128x128xbf16>
    %cst_8 = arith.constant dense<0.000000e+00> : vector<8x128xf32>
    %12 = tpu.matmul %10, %11, %cst_8 {dimension_numbers = #tpu.dot_dimension_numbers<[1], [0], [0], [1], [0, 0, 1, 1], [], []>} : vector<8x128xbf16>, vector<128x128xbf16>, vector<8x128xf32> -> vector<8x128xf32>
    %c0_9 = arith.constant 0 : index
    %c0_10 = arith.constant 0 : index
    %13 = vector.load %arg5[%c0_9, %c0_10] : memref<1x128xf32, #tpu.memory_space<vmem>>, vector<1x128xf32>
    %14 = vector.broadcast %13 : vector<1x128xf32> to vector<8x128xf32>
    %15 = arith.addf %12, %14 : vector<8x128xf32>
    %16 = arith.addf %15, %9 : vector<8x128xf32>
    %cst_11 = arith.constant 0.000000e+00 : f32
    %17 = vector.broadcast %cst_11 : f32 to vector<8x128xf32>
    %18 = arith.maximumf %16, %17 : vector<8x128xf32>
    %c0_12 = arith.constant 0 : index
    %c0_13 = arith.constant 0 : index
    %19 = vector.load %arg6[%c0_12, %c0_13] : memref<8x128xf32, #tpu.memory_space<vmem>>, vector<8x128xf32>
    tpu.vector_store %arg6[%c0_12, %c0_13], %18 {strides = array<i32>} : memref<8x128xf32, #tpu.memory_space<vmem>>, vector<8x128xf32>,
    return
  }
  func.func @transform_0(%arg0: i32) -> (i32, i32) {
    %c0_i32 = arith.constant 0 : i32
    %c0_i32_0 = arith.constant 0 : i32
    return %arg0, %c0_i32 : i32, i32
  }
  func.func @transform_1(%arg0: i32) -> (i32, i32) {
    %c0_i32 = arith.constant 0 : i32
    %c0_i32_0 = arith.constant 0 : i32
    %c0_i32_1 = arith.constant 0 : i32
    return %c0_i32, %c0_i32_0 : i32, i32
  }
  func.func @transform_2(%arg0: i32) -> (i32, i32) {
    %c0_i32 = arith.constant 0 : i32
    %c0_i32_0 = arith.constant 0 : i32
    %c0_i32_1 = arith.constant 0 : i32
    return %c0_i32, %c0_i32_0 : i32, i32
  }
  func.func @transform_3(%arg0: i32) -> (i32, i32) {
    %c0_i32 = arith.constant 0 : i32
    %c0_i32_0 = arith.constant 0 : i32
    %c0_i32_1 = arith.constant 0 : i32
    return %c0_i32, %c0_i32_0 : i32, i32
  }
  func.func @transform_4(%arg0: i32) -> (i32, i32) {
    %c0_i32 = arith.constant 0 : i32
    %c0_i32_0 = arith.constant 0 : i32
    %c0_i32_1 = arith.constant 0 : i32
    return %c0_i32, %c0_i32_0 : i32, i32
  }
  func.func @transform_5(%arg0: i32) -> (i32, i32) {
    %c0_i32 = arith.constant 0 : i32
    %c0_i32_0 = arith.constant 0 : i32
    return %arg0, %c0_i32 : i32, i32
  }
}

</mosaic_0001>

<bundles_post_ra>
// kernel: tpu_custom_call.1
= control target key start
LH: loop header
LB: loop body
LE: loop exit
PB: predicated region body
PF: predicated region fallthrough
CT: control target
= control target key end

     0   :  { %10 = vsyncpa [#allocation3], 0  ;;  %s629_s0 = inlined_call_operand.hbm [shape: bf16[8,128], index: 0, kind: input, shape index: {}]   ;;  %s630_s1 = inlined_call_operand.hbm [shape: bf16[128,256], index: 1, kind: input, shape index: {}]   ;;  %s631_s2 = inlined_call_operand.hbm [shape: f32[1,256], index: 2, kind: input, shape index: {}]   ;;  %s632_s3 = inlined_call_operand.hbm [shape: bf16[128,128], index: 3, kind: input, shape index: {}]   ;;  %s633_s4 = inlined_call_operand.vmem [shape: f32[1,128], index: 4, kind: input, shape index: {}]   ;;  %s634_s5 = inlined_call_operand.hbm [shape: f32[8,128], index: 5, kind: output, shape index: {}]  }
   0x1   :  { %11 = vsyncpa [#allocation6], 0 }
   0x2   :  { %12 = vsyncpa [#allocation9], 0  ;;  %s29_s20 = sshll.u32 %s630_s1, 4  ;;  %s30_s20 = int_to_ptr.hbm [resolvable:$true] %s29_s20 }
   0x3   :  { %13 = vsyncpa [#allocation4], 0  ;;  %s572_s21 = smov [#allocation5]   ;;  %s19_s25 = sshll.u32 %s629_s0, 4  ;;  %s20_s25 = int_to_ptr.hbm [resolvable:$true] %s19_s25 }
   0x4   :  { %s31_s22 = sshll.u32 %s572_s21, 4  ;;  %s573_s26 = smov 128   ;;  %s32_s22 = int_to_ptr.vmem [resolvable:$true] %s31_s22 }
   0x5   :  { %s574_s27 = smov 8   ;;  %s575_s28 = smov [#allocation2]  }
   0x6   :  { %37 = dma.hbm_to_vmem [thread:$0]  %s30_s20, 2048, %s32_s22, [#allocation6], %s573_s26, %s573_s26, %s574_s27  }
   0x7   :  { %s21_s29 = sshll.u32 %s575_s28, 4  ;;  %s43_s7 = sshll.u32 %s631_s2, 4  ;;  %s22_s29 = int_to_ptr.vmem [resolvable:$true] %s21_s29  ;;  %s44_s7 = int_to_ptr.hbm [resolvable:$true] %s43_s7 }
   0x8   :  { %24 = dma.hbm_to_vmem [thread:$0]  %s20_s25, 64, %s22_s29, [#allocation3]  }
   0x9   :  { %s53_s9 = sshll.u32 %s632_s3, 4  ;;  %s576_s10 = smov [#allocation7]   ;;  %s54_s9 = int_to_ptr.hbm [resolvable:$true] %s53_s9 }
   0xa   :  { %s45_s11 = sshll.u32 %s576_s10, 4  ;;  %s577_s0 = smov [#allocation8]   ;;  %s46_s11 = int_to_ptr.vmem [resolvable:$true] %s45_s11 }
   0xb   :  { %48 = dma.hbm_to_vmem [thread:$0]  %s44_s7, 32, %s46_s11, [#allocation6]  }
   0xc   :  { %s55_s12 = sshll.u32 %s577_s0, 4  ;;  %s578_s13 = smov 64   ;;  %s56_s12 = int_to_ptr.vmem [resolvable:$true] %s55_s12 }
   0xd   :  { %s579_s14 = smov 4  }
   0xe   :  { %61 = dma.hbm_to_vmem [thread:$0]  %s54_s9, 1024, %s56_s12, [#allocation9], %s578_s13, %s578_s13, %s579_s14  }
   0xf   :  { %564 = dma.done.wait [#allocation3], 64  }
  0x10   :  { %565 = vsyncadd [#allocation3], 4294967232 }
  0x11   :  { %566 = dma.done.wait [#allocation6], 2080  }
  0x12   :  { %567 = vsyncadd [#allocation6], 4294965216 }
  0x13   :  { %568 = dma.done.wait [#allocation9], 1024  }
  0x14   :  { %569 = vsyncadd [#allocation9], 4294966272  ;;  %v372_v0 = vld [vmem:[#allocation5 + $0x70] sm:$0xf]  ;;  %v425_v1 = vld [vmem:[#allocation5 + $0x74] sm:$0xf0] }
  0x15   :  { %v364_v2 = vld [vmem:[#allocation5 + $0x60] sm:$0xf]  ;;  %v373_v3 = vor.u32 %v425_v1, %v372_v0  ;;  %v423_v4 = vld [vmem:[#allocation5 + $0x64] sm:$0xf0]  ;;  %v356_v6 = vld [vmem:[#allocation5 + $0x50] sm:$0xf] }
  0x16   :  { %v365_v5 = vor.u32 %v423_v4, %v364_v2  ;;  %v421_v7 = vld [vmem:[#allocation5 + $0x54] sm:$0xf0]  ;;  %v424_v8 = vld [vmem:[#allocation5 + $0x74] sm:$0xf]  ;;  %v374_v9 = vld [vmem:[#allocation5 + $0x78] sm:$0xf0] }
  0x17   :  { %183 = vmatpush.bf16.msra.mxu0 %v373_v3  ;;  %v433_v10 = vld [vmem:[#allocation8 + $0x38] sm:$0xff]  ;;  %v422_v11 = vld [vmem:[#allocation5 + $0x64] sm:$0xf]  ;;  %v357_v12 = vor.u32 %v421_v7, %v356_v6  ;;  %v377_v13 = vor.u32 %v424_v8, %v374_v9  ;;  %v366_v14 = vld [vmem:[#allocation5 + $0x68] sm:$0xf0]  ;;  %s580_s15 = smov [#allocation10]  }
  0x18   :  { %v348_v15 = vld [vmem:[#allocation5 + $0x40] sm:$0xf]  ;;  %v419_v16 = vld [vmem:[#allocation5 + $0x44] sm:$0xf0]  ;;  %279 = vmatpush.bf16.msra.mxu2 %v433_v10  ;;  %v432_v17 = vld [vmem:[#allocation8 + $0x30] sm:$0xff]  ;;  %v369_v18 = vor.u32 %v422_v11, %v366_v14  ;;  %s300_s16 = sshll.u32 %s580_s15, 4  ;;  %s301_s16 = int_to_ptr.vmem [resolvable:$true] %s300_s16 }
  0x19   :  { %196 = vmatpush.bf16.msra.mxu1 %v377_v13  ;;  %v420_v19 = vld [vmem:[#allocation5 + $0x54] sm:$0xf]  ;;  %v358_v20 = vld [vmem:[#allocation5 + $0x58] sm:$0xf0]  ;;  %v349_v21 = vor.u32 %v419_v16, %v348_v15  ;;  %v340_v22 = vld [vmem:[#allocation5 + $0x30] sm:$0xf] }
  0x1a   :  { %v417_v23 = vld [vmem:[#allocation5 + $0x34] sm:$0xf0]  ;;  %v431_v24 = vld [vmem:[#allocation8 + $0x28] sm:$0xff]  ;;  %v361_v25 = vor.u32 %v420_v19, %v358_v20  ;;  %v418_v26 = vld [vmem:[#allocation5 + $0x44] sm:$0xf]  ;;  %s302_s19 = sshll.u32 %s634_s5, 4  ;;  %s303_s19 = int_to_ptr.hbm [resolvable:$true] %s302_s19 }
  0x1b   :  { %184 = vmatpush.bf16.msra.mxu0 %v365_v5  ;;  %v350_v27 = vld [vmem:[#allocation5 + $0x48] sm:$0xf0]  ;;  %v341_v28 = vor.u32 %v417_v23, %v340_v22  ;;  %v332_v29 = vld [vmem:[#allocation5 + $0x20] sm:$0xf]  ;;  %v415_v30 = vld [vmem:[#allocation5 + $0x24] sm:$0xf0] }
  0x1c   :  { %280 = vmatpush.bf16.msra.mxu2 %v432_v17  ;;  %v430_v31 = vld [vmem:[#allocation8 + $0x20] sm:$0xff]  ;;  %v353_v32 = vor.u32 %v418_v26, %v350_v27  ;;  %v416_v33 = vld [vmem:[#allocation5 + $0x34] sm:$0xf]  ;;  %v342_v34 = vld [vmem:[#allocation5 + $0x38] sm:$0xf0]  ;;  %v333_v35 = vor.u32 %v415_v30, %v332_v29 }
  0x1d   :  { %197 = vmatpush.bf16.msra.mxu1 %v369_v18  ;;  %v324_v36 = vld [vmem:[#allocation5 + $0x10] sm:$0xf]  ;;  %v413_v37 = vld [vmem:[#allocation5 + $0x14] sm:$0xf0]  ;;  %v345_v39 = vor.u32 %v416_v33, %v342_v34  ;;  %v414_v40 = vld [vmem:[#allocation5 + $0x24] sm:$0xf] }
  0x1e   :  { %v429_v38 = vld [vmem:[#allocation8 + $0x18] sm:$0xff]  ;;  %v334_v41 = vld [vmem:[#allocation5 + $0x28] sm:$0xf0]  ;;  %v325_v42 = vor.u32 %v413_v37, %v324_v36  ;;  %v411_v44 = vld [vmem:[#allocation5 + $0x4] sm:$0xf0] }
  0x1f   :  { %185 = vmatpush.bf16.msra.mxu0 %v357_v12  ;;  %v316_v43 = vld [vmem:[#allocation5] sm:$0xf]  ;;  %v428_v45 = vld [vmem:[#allocation8 + $0x10] sm:$0xff]  ;;  %v337_v46 = vor.u32 %v414_v40, %v334_v41  ;;  %v326_v48 = vld [vmem:[#allocation5 + $0x18] sm:$0xf0] }
  0x20   :  { %281 = vmatpush.bf16.msra.mxu2 %v431_v24  ;;  %v412_v47 = vld [vmem:[#allocation5 + $0x14] sm:$0xf]  ;;  %v317_v49 = vor.u32 %v411_v44, %v316_v43  ;;  %v80_v51 = vld [vmem:[#allocation2] sm:$0xf]  ;;  %v427_v52 = vld [vmem:[#allocation8 + $0x8] sm:$0xff] }
  0x21   :  { %198 = vmatpush.bf16.msra.mxu1 %v361_v25  ;;  %v329_v50 = vor.u32 %v412_v47, %v326_v48  ;;  %v410_v53 = vld [vmem:[#allocation5 + $0x4] sm:$0xf]  ;;  %v318_v54 = vld [vmem:[#allocation5 + $0x8] sm:$0xf0]  ;;  %v97_v57 = vld [vmem:[#allocation7] sm:$0x3] }
  0x22   :  { %v321_v55 = vor.u32 %v410_v53, %v318_v54  ;;  %v426_v56 = vld [vmem:[#allocation8] sm:$0xff]  ;;  %v99_v58 = vperm.slane %v97_v57, 0  ;;  %v100_v2 = vperm.slane %v97_v57, 1  ;;  %v443_v3 = vld [vmem:[%s633_s4] ss:$0 sm:$0xff] }
  0x23   :  { %186 = vmatpush.bf16.msra.mxu0 %v349_v21 }
  0x24   :  { %282 = vmatpush.bf16.msra.mxu2 %v430_v31 }
  0x25   :  { %199 = vmatpush.bf16.msra.mxu1 %v353_v32 }
  0x27   :  { %187 = vmatpush.bf16.msra.mxu0 %v341_v28 }
  0x28   :  { %283 = vmatpush.bf16.msra.mxu2 %v429_v38 }
  0x29   :  { %200 = vmatpush.bf16.msra.mxu1 %v345_v39 }
  0x2b   :  { %188 = vmatpush.bf16.msra.mxu0 %v333_v35 }
  0x2c   :  { %284 = vmatpush.bf16.msra.mxu2 %v428_v45 }
  0x2d   :  { %201 = vmatpush.bf16.msra.mxu1 %v337_v46 }
  0x2f   :  { %189 = vmatpush.bf16.msra.mxu0 %v325_v42 }
  0x30   :  { %285 = vmatpush.bf16.msra.mxu2 %v427_v52 }
  0x31   :  { %202 = vmatpush.bf16.msra.mxu1 %v329_v50 }
  0x33   :  { %190 = vmatpush.bf16.msra.mxu0 %v317_v49 }
  0x34   :  { %286 = vmatpush.bf16.msra.mxu2 %v426_v56 }
  0x35   :  { %203 = vmatpush.bf16.msra.mxu1 %v321_v55 }
  0x36   :  { %191 = vmatmul.bf16.vlgmr.msra.gmra.mxu0 %v80_v51 }
  0x38   :  { %204 = vmatmul.bf16.vlgmr.msra.gmra.mxu1 %v80_v51 }
  0xb3   :  { %v192_v59 = vpop.f32.mrf.mxu0 }
  0xb4   :  { %v193_v60 = vadd.f32 %v192_v59, %v99_v58 }
  0xb5   :  { %v205_v0 = vpop.f32.mrf.mxu1 }
  0xb6   :  { %v209_v61 = vmax.f32 %v193_v60, 0.0  ;;  %v206_v4 = vadd.f32 %v205_v0, %v100_v2 }
  0xb8   :  { %v210_v62 = vpack.c.bf16 %v209_v61, %v209_v61 }
  0xba   :  { %287 = vmatmul.bf16.vlgmr.msra.gmra.mxu2 %v210_v62 }
  0xbb   :  { %v194_v63 = vpop.f32.mrf.mxu0 }
  0xbd   :  { %v207_v1 = vpop.f32.mrf.mxu1 }
 0x13d   :  { %v288_v5 = vpop.f32.mrf.mxu2 }
 0x13e   :  { %v289_v6 = vadd.f32 %v443_v3, %v288_v5 }
 0x140   :  { %v292_v7 = vadd.f32 %v289_v6, %v206_v4 }
 0x142   :  { %v293_v8 = vmax.f32 %v292_v7, 0.0 }
 0x144   :  { %294 = vst [vmem:[#allocation10] sm:$0xff] %v293_v8 }
 0x145   :  { %v290_v9 = vpop.f32.mrf.mxu2  ;;  %305 = dma.vmem_to_hbm [thread:$0]  %s301_s16, 128, %s303_s19, [#allocation4]  }
 0x146   :  { %570 = dma.done.wait [#allocation4], 128  }
 0x147   :  { %571 = vsyncadd [#allocation4], 4294967168 }
 0x148   :  { %310 = vsyncpa [#allocation3], 1 }
 0x149   :  { %311 = vsyncpa [#allocation6], 1 }
 0x14a   :  { %312 = vsyncpa [#allocation9], 1 }
 0x14b   :  { %313 = vsyncpa [#allocation4], 1 }

</bundles_post_ra>
